<compile_context>
chip_gen: v7x
topology: tpu7x:2x2x1
jax: 0.10.0
libtpu: 0.0.40
codegen_flags: <defaults>
</compile_context>

<pallas_src>
import jax
import jax.numpy as jnp
import numpy as np
from jax.experimental import pallas as pl
from jax.experimental.pallas import tpu as pltpu


def _rope_kernel(pos_ref, inv_freq_ref, sign_ref, x_ref, o_ref):
    # pos_ref: (tT, 1) f32 ; inv_freq_ref / sign_ref: (1, D) f32
    # x_ref / o_ref: (H, tT, D) in the input dtype.
    x = x_ref[...]                       # keep native dtype (bf16 stays bf16)
    half = x.shape[-1] // 2

    # Per-(t, d) angle; inv_freq already carries the cat(freqs, freqs) layout.
    theta = pos_ref[...] * inv_freq_ref[...]          # (tT, D) f32
    cos = jnp.cos(theta)                              # (tT, D) f32
    sin_signed = jnp.sin(theta) * sign_ref[...]       # rotate_half sign folded

    cos = cos.astype(x.dtype)[None]                   # (1, tT, D)
    sin_signed = sin_signed.astype(x.dtype)[None]     # (1, tT, D)

    # rotate_half via an XLU lane rotation (shift = D/2, so direction is moot):
    #   roll(x, D/2) = cat(x2, x1); the sign pattern turns it into cat(-x2, x1)
    #   after the multiply with sin_signed.
    x_rot = pltpu.roll(x, shift=half, axis=2)

    o_ref[...] = (x * cos + x_rot * sin_signed).astype(o_ref.dtype)


def _sublane_multiple(itemsize):
    # Rows packed per vreg along sublanes: 8 (4-byte), 16 (2-byte), 32 (1-byte).
    return {4: 8, 2: 16, 1: 32}.get(itemsize, 8)


def _choose_tile_t(T, H, D, itemsize, target_bytes):
    """Sequence-tile length: a multiple of the sublane pack, sized so the
    (H, tT, D) block ~fits target_bytes.  No divisor-of-T requirement."""
    sub = _sublane_multiple(itemsize)
    if T <= sub:
        return T                                  # full (layout-legal) extent
    t_cap = -(-T // sub) * sub                    # round_up(T, sub)
    row_bytes = H * D * itemsize
    tT = max(sub, (target_bytes // row_bytes) // sub * sub)
    return int(min(tT, t_cap))


def rotary_embedding(x, pos, *, base=10000, target_block_bytes=4 << 20):
    """x: [B, H, T, D] float, pos: [B, T] integer positions."""
    B, H, T, D = x.shape
    assert D % 2 == 0
    half = D // 2
    itemsize = jnp.dtype(x.dtype).itemsize

    # TODO(synk): positions >= 2^24 lose exactness in the f32 cast (very long
    # contexts only); the PyTorch reference uses the same float32 trig path.
    pos_f = pos.astype(jnp.float32).reshape(B, T, 1)

    # Trace-time constants (D and base are static Python values).
    dims_half = np.arange(0, D, 2, dtype=np.float32)
    inv_half = (1.0 / np.float32(base) ** (dims_half / np.float32(D)))
    inv_freq = np.concatenate([inv_half, inv_half]).astype(np.float32).reshape(1, D)
    sign = np.concatenate([-np.ones(half, np.float32),
                           np.ones(half, np.float32)]).reshape(1, D)

    tT = _choose_tile_t(T, H, D, itemsize, target_block_bytes)
    n_t = pl.cdiv(T, tT)

    # v7x megacore: make sure both TensorCores get grid work when possible.
    sub = _sublane_multiple(itemsize)
    if B * n_t < 2 and T > sub:
        tT = max(sub, -(-((T + 1) // 2) // sub) * sub)
        n_t = pl.cdiv(T, tT)

    # Scoped-VMEM budget: double-buffered in + out blocks, ~2 blocks of
    # roll/compute temporaries, the f32 trig temps, plus margin.  Explicitly
    # raising the limit keeps v5e's 16 MiB scoped default from biting while
    # staying under v7x's 64 MiB physical VMEM.
    block_bytes = H * tT * D * itemsize
    trig_bytes = 4 * tT * D * 4
    needed = 6 * block_bytes + trig_bytes + (2 << 20)
    vmem_limit = int(min(60 << 20, max(32 << 20, needed)))

    return pl.pallas_call(
        _rope_kernel,
        out_shape=jax.ShapeDtypeStruct((B, H, T, D), x.dtype),
        grid=(B, n_t),
        in_specs=[
            pl.BlockSpec((None, tT, 1), lambda b, t: (b, t, 0)),
            pl.BlockSpec((1, D), lambda b, t: (0, 0)),
            pl.BlockSpec((1, D), lambda b, t: (0, 0)),
            pl.BlockSpec((None, H, tT, D), lambda b, t: (b, 0, t, 0)),
        ],
        out_specs=pl.BlockSpec((None, H, tT, D), lambda b, t: (b, 0, t, 0)),
        compiler_params=pltpu.CompilerParams(
            dimension_semantics=("parallel", "parallel"),
            vmem_limit_bytes=vmem_limit),
    )(pos_f, jnp.asarray(inv_freq), jnp.asarray(sign), x)


def _rope_reference(x, pos, *, base=10000):
    """Pure-JAX reference mirroring the PyTorch module."""
    dtype = x.dtype
    xf = x.astype(jnp.float32)
    B, H, T, D = x.shape
    dims_half = jnp.arange(0, D, 2, dtype=jnp.float32)
    inv_freq = 1.0 / (base ** (dims_half / D))
    freqs = jnp.einsum("bi,j->bij", pos.astype(jnp.float32), inv_freq)
    embds = jnp.concatenate([freqs, freqs], axis=-1)
    cos = jnp.cos(embds)[:, None]
    sin = jnp.sin(embds)[:, None]
    x1, x2 = jnp.split(xf, 2, axis=-1)
    x_rot = jnp.concatenate([-x2, x1], axis=-1)
    return (xf * cos + x_rot * sin).astype(dtype)


if __name__ == "__main__":
    B, H, T, D = 2, 4, 8, 32
    key = jax.random.PRNGKey(0)
    kx, kp = jax.random.split(key)
    x = jax.random.normal(kx, (B, H, T, D), dtype=jnp.float32)
    pos = jax.random.randint(kp, (B, T), 0, 128, dtype=jnp.int32)

    out = jax.block_until_ready(rotary_embedding(x, pos, base=10000))

    ref = _rope_reference(x, pos, base=10000)
    np.testing.assert_allclose(np.asarray(out), np.asarray(ref),
                               rtol=1e-4, atol=1e-4)
    print("KERNEL_OK")
</pallas_src>

<mosaic_0001>
module attributes {stable_mosaic.version = 11 : i64} {
  func.func @_rope_kernel(%arg0: i32, %arg1: i32, %arg2: memref<1x8x1xf32, #tpu.memory_space<vmem>>, %arg3: memref<1x32xf32, #tpu.memory_space<vmem>>, %arg4: memref<1x32xf32, #tpu.memory_space<vmem>>, %arg5: memref<1x4x8x32xf32, #tpu.memory_space<vmem>>, %arg6: memref<1x4x8x32xf32, #tpu.memory_space<vmem>>) attributes {dimension_semantics = [#tpu.dimension_semantics<parallel>, #tpu.dimension_semantics<parallel>], iteration_bounds = array<i64: 2, 1>, scalar_prefetch = 0 : i64, scratch_operands = 0 : i64, tpu.core_type = #tpu.core_type<tc>, window_params = [{transform_indices = @transform_0, window_bounds = array<i64: 1, 8, 1>}, {pipeline_mode = #tpu.pipeline_mode<synchronous>, transform_indices = @transform_1, window_bounds = array<i64: 1, 32>}, {pipeline_mode = #tpu.pipeline_mode<synchronous>, transform_indices = @transform_2, window_bounds = array<i64: 1, 32>}, {transform_indices = @transform_3, window_bounds = array<i64: 1, 4, 8, 32>}, {transform_indices = @transform_4, window_bounds = array<i64: 1, 4, 8, 32>}]} {
    %c0 = arith.constant 0 : index
    %c0_0 = arith.constant 0 : index
    %c0_1 = arith.constant 0 : index
    %c0_2 = arith.constant 0 : index
    %0 = vector.load %arg5[%c0, %c0_0, %c0_1, %c0_2] : memref<1x4x8x32xf32, #tpu.memory_space<vmem>>, vector<1x4x8x32xf32>
    %1 = vector.shape_cast %0 : vector<1x4x8x32xf32> to vector<4x8x32xf32>
    %c0_3 = arith.constant 0 : index
    %c0_4 = arith.constant 0 : index
    %c0_5 = arith.constant 0 : index
    %2 = vector.load %arg2[%c0_3, %c0_4, %c0_5] : memref<1x8x1xf32, #tpu.memory_space<vmem>>, vector<1x8x1xf32>
    %3 = vector.shape_cast %2 : vector<1x8x1xf32> to vector<8x1xf32>
    %c0_6 = arith.constant 0 : index
    %c0_7 = arith.constant 0 : index
    %4 = vector.load %arg3[%c0_6, %c0_7] : memref<1x32xf32, #tpu.memory_space<vmem>>, vector<1x32xf32>
    %5 = vector.broadcast %3 : vector<8x1xf32> to vector<8x32xf32>
    %6 = vector.broadcast %4 : vector<1x32xf32> to vector<8x32xf32>
    %7 = arith.mulf %5, %6 : vector<8x32xf32>
    %8 = math.cos %7 : vector<8x32xf32>
    %9 = math.sin %7 : vector<8x32xf32>
    %c0_8 = arith.constant 0 : index
    %c0_9 = arith.constant 0 : index
    %10 = vector.load %arg4[%c0_8, %c0_9] : memref<1x32xf32, #tpu.memory_space<vmem>>, vector<1x32xf32>
    %11 = vector.broadcast %10 : vector<1x32xf32> to vector<8x32xf32>
    %12 = arith.mulf %9, %11 : vector<8x32xf32>
    %13 = vector.shape_cast %8 : vector<8x32xf32> to vector<1x8x32xf32>
    %14 = vector.shape_cast %12 : vector<8x32xf32> to vector<1x8x32xf32>
    %c16_i32 = arith.constant 16 : i32
    %15 = tpu.dynamic_rotate %1 by %c16_i32 dim 2 : vector<4x8x32xf32>, i32 -> vector<4x8x32xf32>
    %16 = vector.broadcast %13 : vector<1x8x32xf32> to vector<4x8x32xf32>
    %17 = arith.mulf %1, %16 : vector<4x8x32xf32>
    %18 = vector.broadcast %14 : vector<1x8x32xf32> to vector<4x8x32xf32>
    %19 = arith.mulf %15, %18 : vector<4x8x32xf32>
    %20 = arith.addf %17, %19 : vector<4x8x32xf32>
    %c0_10 = arith.constant 0 : index
    %c0_11 = arith.constant 0 : index
    %c0_12 = arith.constant 0 : index
    %c0_13 = arith.constant 0 : index
    %21 = vector.load %arg6[%c0_10, %c0_11, %c0_12, %c0_13] : memref<1x4x8x32xf32, #tpu.memory_space<vmem>>, vector<1x4x8x32xf32>
    %22 = vector.shape_cast %21 : vector<1x4x8x32xf32> to vector<4x8x32xf32>
    %23 = vector.shape_cast %20 : vector<4x8x32xf32> to vector<1x4x8x32xf32>
    tpu.vector_store %arg6[%c0_10, %c0_11, %c0_12, %c0_13], %23 {strides = array<i32>} : memref<1x4x8x32xf32, #tpu.memory_space<vmem>>, vector<1x4x8x32xf32>,
    return
  }
  func.func @transform_0(%arg0: i32, %arg1: i32) -> (i32, i32, i32) {
    %c0_i32 = arith.constant 0 : i32
    %c0_i32_0 = arith.constant 0 : i32
    return %arg0, %arg1, %c0_i32 : i32, i32, i32
  }
  func.func @transform_1(%arg0: i32, %arg1: i32) -> (i32, i32) {
    %c0_i32 = arith.constant 0 : i32
    %c0_i32_0 = arith.constant 0 : i32
    %c0_i32_1 = arith.constant 0 : i32
    return %c0_i32, %c0_i32_0 : i32, i32
  }
  func.func @transform_2(%arg0: i32, %arg1: i32) -> (i32, i32) {
    %c0_i32 = arith.constant 0 : i32
    %c0_i32_0 = arith.constant 0 : i32
    %c0_i32_1 = arith.constant 0 : i32
    return %c0_i32, %c0_i32_0 : i32, i32
  }
  func.func @transform_3(%arg0: i32, %arg1: i32) -> (i32, i32, i32, i32) {
    %c0_i32 = arith.constant 0 : i32
    %c0_i32_0 = arith.constant 0 : i32
    %c0_i32_1 = arith.constant 0 : i32
    return %arg0, %c0_i32, %arg1, %c0_i32_0 : i32, i32, i32, i32
  }
  func.func @transform_4(%arg0: i32, %arg1: i32) -> (i32, i32, i32, i32) {
    %c0_i32 = arith.constant 0 : i32
    %c0_i32_0 = arith.constant 0 : i32
    %c0_i32_1 = arith.constant 0 : i32
    return %arg0, %c0_i32, %arg1, %c0_i32_0 : i32, i32, i32, i32
  }
}

</mosaic_0001>

<bundles_post_ra>
// kernel: tpu_custom_call.1
= control target key start
LH: loop header
LB: loop body
LE: loop exit
PB: predicated region body
PF: predicated region fallthrough
CT: control target
= control target key end

     0   :  { %9 = vsyncpa [#allocation3], 0  ;;  %s1186_s0 = inlined_call_operand.vmem [shape: f32[2,8,1], index: 0, kind: input, shape index: {}]   ;;  %s1187_s1 = inlined_call_operand.vmem [shape: f32[1,32], index: 1, kind: input, shape index: {}]   ;;  %s1188_s2 = inlined_call_operand.vmem [shape: f32[1,32], index: 2, kind: input, shape index: {}]   ;;  %s1189_s3 = inlined_call_operand.hbm [shape: f32[2,4,8,32], index: 3, kind: input, shape index: {}]   ;;  %s1190_s4 = inlined_call_operand.hbm [shape: f32[2,4,8,32], index: 4, kind: output, shape index: {}]  }
   0x1   :  { %11 = vsyncpa [#allocation3 + $0x1], 0 }
   0x2   :  { %12 = vsyncpa [#allocation4], 0 }
   0x3   :  { %14 = vsyncpa [#allocation4 + $0x1], 0  ;;  %s939_s15 = smov 0   ;;  %s941_s16 = smov 0  }
   0x4   :  { %s943_s17 = smov 0   ;;  %s945_s18 = smov 0  }
   0x5   :  { %s947_s19 = smov 0   ;;  %s949_s20 = smov 0  }
   0x6 LB: > { %s671_s21 = sadd.s32 4294967295, %s896_s20   ;;  %s672_s22 = sadd.s32 4294967294, %s896_s20   ;;  %s896_s20 = sphi %s949_s20, %s20_s20   ;;  %s892_s19 = sphi %s947_s19, %s1205_s19   ;;  %s888_s18 = sphi %s945_s18, %s1204_s18   ;;  %s884_s17 = sphi %s943_s17, %s1203_s17   ;;  %s880_s16 = sphi %s941_s16, %s1202_s16   ;;  %s876_s15 = sphi %s939_s15, %s1201_s15  }
   0x7   : > { %s32_s23 = sadd.s32 1, %s892_s19  ;;  %s111_s24 = sadd.s32 1, %s884_s17 }
   0x8   : > { %p34_p0 = scmp.ge.s32.totalorder %s32_s23, 2  ;;  %p118_p1 = scmp.ne.s32.totalorder %s884_s17, %s880_s16 }
   0x9   : > { %p119_p2 = scmp.eq.s32.totalorder %s896_s20, 0  ;;  %p124_p3 = scmp.ne.s32.totalorder %s880_s16, %s876_s15 }
   0xa   : > { %s1207_s23 = smov (%p34_p0, %s32_s23), 0  ;;  %p125_p5 = scmp.eq.s32.totalorder %s671_s21, 0 }
   0xb   : > { %p980_p4 = por %p119_p2, %p118_p1  ;;  %s106_s26 = ssub.s32 %s892_s19, %s1207_s23 }
   0xc   : > { %p150_p6 = scmp.eq.s32.totalorder %s671_s21, 1  ;;  %p109_p7 = scmp.eq.s32.totalorder %s106_s26, 0 }
   0xd   : > { %p986_p8 = por %p125_p5, %p124_p3  ;;  %p156_p10 = scmp.eq.s32.totalorder %s672_s22, 1 }
   0xe   : > { %p990_p9 = por %p150_p6, %p118_p1  ;;  %p715_p13 = scmp.lt.s32.totalorder %s896_s20, 2 }
   0xf   : > { %s995_s29 = scalar_select %p109_p7, %s884_s17, %s111_s24  }
  0x10   : > { %s1194_s28 = scalar_select %p990_p9, 1, 0 }
  0x11   : > { %p997_p11 = por %p156_p10, %p124_p3  ;;  %s192_s5 = sand.u32 1, %s884_s17  }
  0x12   : > { %s675_s6 = sshll.u32 %s192_s5, 5  ;;  %s697_s7 = sshll.u32 %s892_s19, 9 }
  0x13   : > { %s1195_s30 = scalar_select %p997_p11, 1, 0 }
  0x14   : > { %s1008_s10 = scalar_lea.hbm %s1189_s3, %s697_s7  ;;  %s196_s11 = scalar_lea.vmem [#allocation2], %s675_s6 }
  0x15   : > { %s204_s12 = sshll.u32 %s196_s11, 4  ;;  %p1014_p0 = pnand %p715_p13, %p980_p4  ;;  %s1010_s12 = int_to_ptr.vmem [resolvable:$true] %s204_s12 }
  0x16   : > { %s1019_s14 = scalar_lea.sflag [#allocation3], %s192_s5  ;;  %s784_s21 = scalar_lea.hbm %s1008_s10, 512 }
  0x17   : > { %p785_p2 = scmp.ne.s32.totalorder %s1008_s10, %s784_s21  ;;  %p786_p3 = pneg %p1014_p0 }
  0x18   : > { %s789_s25 = scalar_lea.hbm %s1189_s3, 1024  ;;  %p790_p4 = scmp.lt.u32.totalorder %s1008_s10, %s1189_s3 }
  0x19   : > { %p787_p5 = pnand %p786_p3, %p785_p2  ;;  %p791_p7 = scmp.lt.u32.totalorder %s789_s25, %s784_s21 }
  0x1a   : > { %p793_p13 = scmp.lt.u32.totalorder %s784_s21, %s1008_s10 }
  0x1b   : > { %p788_p6 = pneg %p787_p5  ;;  %p792_p10 = por %p791_p7, %p790_p4 }
  0x1d   : > { %p794_p12 = por %p793_p13, %p792_p10 }
  0x1f   : > { %p795_p1 = pnand %p794_p12, %p788_p6 }
  0x21   : > { %798 = shalt.err (!%p795_p1)
}
  0x22   : > { %s799_s5 = scalar_lea.vmem %s1010_s12, 512  ;;  %s898_s7 = smov [#allocation2]  }
  0x23   : > { %p800_p2 = scmp.ne.s32.totalorder %s1010_s12, %s799_s5  ;;  %s804_s8 = sshll.u32 %s898_s7, 4  ;;  %s805_s8 = int_to_ptr.vmem [resolvable:$false] %s804_s8 }
  0x24   : > { %s806_s9 = scalar_lea.vmem %s805_s8, 1024  ;;  %p807_p9 = scmp.lt.s32.totalorder %s1010_s12, %s805_s8 }
  0x25   : > { %p802_p5 = pnand %p800_p2, %p786_p3  ;;  %p808_p4 = scmp.lt.s32.totalorder %s806_s9, %s799_s5 }
  0x27   : > { %p803_p11 = pneg %p802_p5  ;;  %p809_p7 = por %p808_p4, %p807_p9 }
  0x29   : > { %p810_p10 = pnand %p809_p7, %p803_p11 }
  0x2b   : > { %813 = shalt.err (!%p810_p10)
}
  0x2c   : > { %s899_s11 = smov 128   ;;  %s900_s21 = smov 8  }
  0x2d   : > { %710 = dma.hbm_to_vmem [thread:$0]  (!%p1014_p0), %s1008_s10, 512, %s1010_s12, %s1019_s14, %s899_s11, %s899_s11, %s900_s21  }
  0x2e   : > { %p212_p12 = scmp.lt.s32.totalorder %s896_s20, 3  ;;  %p1197_p1 = scmp.ge.s32.totalorder %s896_s20, 1 }
  0x30   : > { %p213_p3 = pnand %p1197_p1, %p212_p12 }
  0x31   : > { %s1051_s22 = sand.u32 (!%p213_p3), 1, %s880_s16  }
  0x32   : > { %216 = sbr.rel (%p213_p3) target bundleno = 529 (0x211), region = 36  ;;  %s679_s24 = sshll.u32 (!%p213_p3), %s1051_s22, 5 }
  0x33   : > { %s219_s25 = scalar_lea.sflag (!%p213_p3), [#allocation3], %s1051_s22  ;;  %s222_s26 = scalar_lea.vmem (!%p213_p3), [#allocation2], %s679_s24 }
  0x39   : > { %867 = dma.done.wait (%p986_p8), %s219_s25, 512  }
  0x3a   : > { %869 = vsyncadd (%p986_p8), %s219_s25, 4294966784  ;;  %p254_p9 = scmp.lt.s32.totalorder %s888_s18, 1  ;;  %v901_v0 = vmov 0   ;;  %v1066_v2 = vld [vmem:[%s222_s26 + $0x8] sm:$0xff]  ;;  %s902_s5 = smov 32   ;;  %v1069_v3 = vld [vmem:[%s222_s26] sm:$0xff] }
  0x3b   : > { %779 = vset.pattern.permute.xlu0 %v901_v0  ;;  %498 = vrot.lane.b32.xlu1 %v1066_v2, %s902_s5  ;;  %v1071_v4 = vld [vmem:[%s222_s26 + $0x10] sm:$0xff]  ;;  %v1075_v5 = vld [vmem:[%s222_s26 + $0x18] sm:$0xff]  ;;  %vm494_vm0 = vcmask 1047808   ;;  %v903_v27 = vmov 683565275   ;;  %s909_s11 = smov 16  }
  0x3c   : > { %s255_s10 = scalar_select %p254_p9, %s888_s18, 1  ;;  %v682_v8 = vld [vmem:[%s1187_s1] ss:$0 sm:$0xff]  ;;  %v904_v29 = vmov 2475754826  }
  0x3d   : > { %v905_v32 = vmov 2131351028   ;;  %v906_v35 = vmov 2102212464   ;;  %v907_v38 = vmov 920167782  }
  0x3e   : > { %s681_s12 = sshll.u32 %s255_s10, 3  ;;  %v908_v41 = vmov 1326507024   ;;  %s910_s21 = smov 112  }
  0x3f   : > { %s260_s6 = scalar_lea.vmem %s1186_s0, %s681_s12  ;;  %501 = vrot.lane.b32.xlu1 %v1071_v4, %s902_s5  ;;  %s253_s25 = scalar_lea.vmem [#allocation5], %s679_s24 }
  0x40   : > { %v265_v1 = vld [vmem:[%s260_s6] sm:$0xff]  ;;  %s571_s26 = sshll.u32 %s253_s25, 4  ;;  %s698_s10 = sshll.u32 %s888_s18, 9  ;;  %s1126_s26 = int_to_ptr.vmem [resolvable:$true] %s571_s26 }
  0x41   : > { %269 = vperm.xlu0 %779, %v265_v1   ;;  %s1135_s18 = scalar_lea.hbm %s1190_s4, %s698_s10  ;;  %s557_s13 = scalar_lea.sflag [#allocation4], %s1051_s22 }
  0x42   : > { %s814_s14 = scalar_lea.vmem %s1126_s26, 512  ;;  %p1198_p11 = scmp.ne.s32.totalorder %s1194_s28, 0 }
  0x43   : > { %p815_p8 = scmp.ne.s32.totalorder %s1126_s26, %s814_s14  ;;  %s911_s6 = smov [#allocation5]  }
  0x45   : > { %495 = vrot.lane.b32.xlu0 %v1069_v3, %s902_s5  ;;  %p816_p0 = pnand %p815_p8, %p1198_p11 }
  0x47   : > { %p817_p6 = pneg %p816_p0 }
  0x49   : > { %504 = vrot.lane.b32.xlu0 %v1075_v5, %s902_s5 }
  0xad   : > { %v499_v6 = vpop.permute.xlu1 %498 }
  0xae   : > { %v500_v7 = vsel %vm494_vm0, %v499_v6, %v1066_v2 }
  0xaf   : > { %509 = vrot.lane.b32.xlu0 %v500_v7, %s902_s5 }
  0xb1   : > { %v502_v13 = vpop.permute.xlu1 %501 }
  0xb2   : > { %v503_v17 = vsel %vm494_vm0, %v502_v13, %v1071_v4 }
  0xc0   : > { %v270_v9 = vpop.permute.xlu0 %269 }
  0xc1   : > { %v1083_v10 = vmul.f32 %v682_v8, %v270_v9 }
  0xc3   : > { %v282_v11 = vand.u32 2139095040, %v1083_v10  ;;  %v279_v21 = vand.u32 2147483647, %v1083_v10  ;;  %vm281_vm8 = vcmp.lt.s32.totalorder %v1083_v10, 0 }
  0xc4   : > { %v496_v12 = vpop.permute.xlu0 %495 }
  0xc5   : > { %v283_v14 = vshrl.u32 %v282_v11, 23  ;;  %v497_v15 = vsel %vm494_vm0, %v496_v12, %v1069_v3  ;;  %v286_v24 = vand.u32 8388607, %v279_v21  ;;  %vm280_vm9 = vcmp.le.f32.partialorder %v279_v21, 0.7853982 }
  0xc6   : > { %507 = vrot.lane.b32.xlu1 %v497_v15, %s902_s5 }
  0xc7   : > { %v683_v16 = vadd.s32 4294967169, %v283_v14  ;;  %v287_v43 = vor.u32 8388608, %v286_v24 }
  0xc8   : > { %v505_v18 = vpop.permute.xlu0 %504 }
  0xc9   : > { %v289_v19 = vadd.s32 1, %v683_v16  ;;  %v506_v20 = vsel %vm494_vm0, %v505_v18, %v1075_v5  ;;  %v327_v57 = vshll.u32 %v287_v43, 8 }
  0xca   : > { %511 = vrot.lane.b32.xlu1 %v503_v17, %s902_s5  ;;  %513 = vrot.lane.b32.xlu0 %v506_v20, %s902_s5  ;;  %s818_s5 = sshll.u32 %s911_s6, 4  ;;  %s819_s5 = int_to_ptr.vmem [resolvable:$false] %s818_s5 }
  0xcb   : > { %vm290_vm1 = vcmp.gt.s32.totalorder %v289_v19, 0  ;;  %s820_s27 = scalar_lea.vmem %s819_s5, 1024  ;;  %p821_p13 = scmp.lt.s32.totalorder %s1126_s26, %s819_s5 }
  0xcc   : > { %v291_v22 = vsel %vm290_vm1, %v289_v19, 0  ;;  %vm371_vm1 = vweird.f32 %v1083_v10  ;;  %p822_p2 = scmp.lt.s32.totalorder %s820_s27, %s814_s14 }
  0xcd   : > { %v293_v23 = vand.u32 31, %v291_v22  ;;  %v292_v26 = vshrl.u32 %v291_v22, 5 }
  0xce   : > { %p823_p5 = por %p822_p2, %p821_p13 }
  0xcf   : > { %v294_v25 = vsub.s32 32, %v293_v23  ;;  %v296_v28 = vshll.u32 %v903_v27, %v293_v23  ;;  %v299_v30 = vshll.u32 %v904_v29, %v293_v23  ;;  %v302_v34 = vshll.u32 %v905_v32, %v293_v23 }
  0xd0   : > { %v305_v37 = vshll.u32 %v906_v35, %v293_v23  ;;  %v308_v40 = vshll.u32 %v907_v38, %v293_v23  ;;  %vm311_vm2 = vcmp.lt.s32.totalorder %v292_v26, 1  ;;  %vm314_vm3 = vcmp.lt.s32.totalorder %v292_v26, 4  ;;  %p824_p4 = pnand %p823_p5, %p817_p6 }
  0xd1   : > { %v297_v31 = vshrl.u32 %v904_v29, %v294_v25  ;;  %v300_v33 = vshrl.u32 %v905_v32, %v294_v25  ;;  %v303_v36 = vshrl.u32 %v906_v35, %v294_v25  ;;  %v306_v39 = vshrl.u32 %v907_v38, %v294_v25 }
  0xd2   : > { %v309_v42 = vshrl.u32 %v908_v41, %v294_v25  ;;  %v295_v52 = vshrl.u32 %v903_v27, %v294_v25  ;;  %vm313_vm4 = vcmp.lt.s32.totalorder %v292_v26, 3  ;;  %vm312_vm5 = vcmp.lt.s32.totalorder %v292_v26, 2 }
  0xd3   : > { %v298_v44 = vor.u32 %v297_v31, %v296_v28  ;;  %v301_v45 = vor.u32 %v300_v33, %v299_v30  ;;  %v304_v46 = vor.u32 %v303_v36, %v302_v34  ;;  %v307_v47 = vor.u32 %v306_v39, %v305_v37 }
  0xd4   : > { %v310_v48 = vor.u32 %v309_v42, %v308_v40 }
  0xd5   : > { %v316_v49 = vsel %vm314_vm3, %v304_v46, 2102212464  ;;  %v319_v50 = vsel %vm311_vm2, %v298_v44, %v301_v45  ;;  %v323_v51 = vsel %vm311_vm2, %v301_v45, %v304_v46  ;;  %v320_v53 = vsel %vm314_vm3, %v307_v47, 920167782 }
  0xd6   : > { %v324_v54 = vsel %vm314_vm3, %v310_v48, 1326507024  ;;  %v321_v55 = vsel %vm313_vm4, %v304_v46, %v320_v53  ;;  %v315_v58 = vsel %vm311_vm2, %v295_v52, %v298_v44  ;;  %v317_v59 = vsel %vm313_vm4, %v301_v45, %v316_v49  ;;  %v691_v49 = vld [vmem:[%s1188_s2] ss:$0 sm:$0xff] }
  0xd7   : > { %v325_v56 = vsel %vm313_vm4, %v307_v47, %v324_v54  ;;  %v322_v60 = vsel %vm312_vm5, %v319_v50, %v321_v55  ;;  %v318_v6 = vsel %vm312_vm5, %v315_v58, %v317_v59  ;;  %vm551_vm2 = vcmask 261120  }
  0xd8   : > { %v326_v61 = vsel %vm312_vm5, %v323_v51, %v325_v56  ;;  %v1098_v0 = vmul.u32.u64.low %v327_v57, %v322_v60  ;;  %v1099_v1 = vmul.u32.u64.high %v327_v57, %v322_v60, %v1098_v0  ;;  %v334_v8 = vmul.u32 %v327_v57, %v318_v6 }
  0xd9   : > { %v1095_v62 = vmul.u32.u64.low %v327_v57, %v326_v61  ;;  %v1096_v63 = vmul.u32.u64.high %v327_v57, %v326_v61, %v1095_v62 }
  0xda   : > { %v337_v7 = vadd.s32 1, %v1099_v1 }
  0xdb   : > { %vm336_vm6 = vc.u32 %v1096_v63, %v1098_v0  ;;  %v335_v22 = vadd.s32 %v1098_v0, %v1096_v63 }
  0xdc   : > { %v338_v9 = vsel %vm336_vm6, %v337_v7, %v1099_v1 }
  0xdd   : > { %v339_v11 = vadd.s32 %v338_v9, %v334_v8 }
  0xdf   : > { %v340_v12 = vadd.s32 536870912, %v339_v11 }
  0xe1   : > { %v341_v13 = vshrl.u32 %v340_v12, 30 }
  0xe3   : > { %v342_v14 = vshll.u32 %v341_v13, 30  ;;  %v365_v34 = vsub.s32 4, %v341_v13 }
  0xe5   : > { %v343_v15 = vsub.s32 %v339_v11, %v342_v14  ;;  %v366_v37 = vsel %vm281_vm8, %v365_v34, %v341_v13 }
  0xe6   : > { %v368_v39 = vsel %vm280_vm9, 0, %v366_v37 }
  0xe7   : > { %v345_v16 = vsub.s32 0, %v343_v15  ;;  %v475_v40 = vadd.s32 3, %v368_v39  ;;  %v372_v42 = vand.u32 3, %v368_v39 }
  0xe9   : > { %v684_v17 = vmin.u32 %v345_v16, %v343_v15  ;;  %v476_v41 = vand.u32 3, %v475_v40  ;;  %vm377_vm11 = vcmp.eq.s32.totalorder %v372_v42, 2  ;;  %vm374_vm13 = vcmp.eq.s32.totalorder %v372_v42, 0 }
  0xea   : > { %vm373_vm15 = vcmp.lt.s32.totalorder %v372_v42, 2 }
  0xeb   : > { %v347_v18 = vclz %v684_v17  ;;  %vm481_vm10 = vcmp.eq.s32.totalorder %v476_v41, 2  ;;  %vm478_vm12 = vcmp.eq.s32.totalorder %v476_v41, 0  ;;  %vm477_vm14 = vcmp.lt.s32.totalorder %v476_v41, 2 }
  0xed   : > { %v685_v19 = vadd.s32 4294967294, %v347_v18 }
  0xef   : > { %vm686_vm7 = vcmp.lt.s32.totalorder %v685_v19, 0 }
  0xf0   : > { %v350_v20 = vsel %vm686_vm7, 0, %v685_v19 }
  0xf1   : > { %v351_v23 = vsub.s32 32, %v350_v20  ;;  %v355_v24 = vsub.s32 4294967266, %v350_v20  ;;  %v352_v25 = vshll.u32 %v343_v15, %v350_v20 }
  0xf3   : > { %v353_v26 = vshrl.u32 %v335_v22, %v351_v23  ;;  %v356_v27 = vadd.s32 127, %v355_v24 }
  0xf5   : > { %v354_v28 = vor.u32 %v353_v26, %v352_v25  ;;  %v357_v29 = vshll.u32 %v356_v27, 23 }
  0xf7   : > { %v358_v30 = vor.u32 4788187, %v357_v29  ;;  %v361_v32 = vcvt.s32.f32 %v354_v28 }
  0xf9   : > { %v359_v31 = vand.u32 2147483647, %v358_v30 }
  0xfb   : > { %v362_v33 = vmul.f32 %v361_v32, %v359_v31 }
  0xfd   : > { %v363_v35 = vxor.u32 2147483648, %v362_v33 }
  0xff   : > { %v364_v36 = vsel %vm281_vm8, %v363_v35, %v362_v33 }
 0x100   : > { %v367_v38 = vsel %vm280_vm9, %v1083_v10, %v364_v36 }
 0x101   : > { %780 = vcosq.f32 %v367_v38 }
 0x102   : > { %782 = vsinq.f32 %v367_v38 }
 0x10b   : > { %v781_v43 = vpop.eup %780 }
 0x10c   : > { %v783_v44 = vpop.eup %782  ;;  %v378_v45 = vxor.u32 2147483648, %v781_v43 }
 0x10d   : > { %v375_v46 = vxor.u32 2147483648, %v783_v44 }
 0x10e   : > { %v483_v47 = vsel %vm481_vm10, %v378_v45, %v783_v44  ;;  %v379_v21 = vsel %vm377_vm11, %v378_v45, %v783_v44 }
 0x10f   : > { %v480_v48 = vsel %vm478_vm12, %v781_v43, %v375_v46  ;;  %v376_v50 = vsel %vm374_vm13, %v781_v43, %v375_v46 }
 0x110   : > { %v484_v51 = vsel %vm477_vm14, %v480_v48, %v483_v47  ;;  %v380_v52 = vsel %vm373_vm15, %v376_v50, %v379_v21 }
 0x111   : > { %v485_v53 = vsel %vm371_vm1, nan, %v484_v51  ;;  %v381_v54 = vsel %vm371_vm1, nan, %v380_v52 }
 0x112   : > { %v493_v55 = vmul.f32 %v691_v49, %v485_v53  ;;  %v520_v8 = vmul.f32 %v381_v54, %v1066_v2  ;;  %v519_v9 = vmul.f32 %v381_v54, %v1069_v3 }
 0x114   : > { %524 = vrot.lane.b32.xlu1 %v493_v55, %s909_s11 }
 0x121   : > { %v510_v58 = vpop.permute.xlu0 %509 }
 0x122   : > { %v516_v61 = vsel %vm494_vm0, %v510_v58, %v1066_v2  ;;  %v522_v2 = vmul.f32 %v381_v54, %v1075_v5 }
 0x138   : > { %v508_v56 = vpop.permute.xlu1 %507 }
 0x139   : > { %v515_v60 = vsel %vm494_vm0, %v508_v56, %v1069_v3  ;;  %v521_v3 = vmul.f32 %v381_v54, %v1071_v4 }
 0x13c   : > { %v512_v57 = vpop.permute.xlu1 %511  ;;  %v514_v59 = vpop.permute.xlu0 %513 }
 0x13d   : > { %v518_v0 = vsel %vm494_vm0, %v514_v59, %v1075_v5  ;;  %v517_v1 = vsel %vm494_vm0, %v512_v57, %v1071_v4 }
 0x186   : > { %v525_v62 = vpop.permute.xlu1 %524 }
 0x187   : > { %v527_v10 = vmul.f32 %v525_v62, %v515_v60  ;;  %v528_v63 = vmul.f32 %v525_v62, %v516_v61  ;;  %v529_v6 = vmul.f32 %v525_v62, %v517_v1  ;;  %v530_v7 = vmul.f32 %v525_v62, %v518_v0 }
 0x189   : > { %535 = vrot.lane.b32.xlu0 %v527_v10, %s910_s21  ;;  %537 = vrot.lane.b32.xlu1 %v528_v63, %s910_s21 }
 0x18d   : > { %539 = vrot.lane.b32.xlu0 %v529_v6, %s910_s21  ;;  %541 = vrot.lane.b32.xlu1 %v530_v7, %s910_s21 }
 0x1fb   : > { %v538_v11 = vpop.permute.xlu1 %537  ;;  %v536_v12 = vpop.permute.xlu0 %535 }
 0x1fc   : > { %v548_v13 = vadd.f32 %v538_v11, %v520_v8  ;;  %v547_v14 = vadd.f32 %v536_v12, %v519_v9 }
 0x1fe   : > { %553 = vst.msk [vmem:[%s253_s25 + $0x8] sm:$0xff] %vm551_vm2, %v548_v13  ;;  %552 = vst.msk [vmem:[%s253_s25] sm:$0xff] %vm551_vm2, %v547_v14 }
 0x1ff   : > { %v542_v15 = vpop.permute.xlu1 %541  ;;  %v540_v16 = vpop.permute.xlu0 %539 }
 0x200   : > { %v550_v17 = vadd.f32 %v542_v15, %v522_v2  ;;  %v549_v18 = vadd.f32 %v540_v16, %v521_v3 }
 0x202   : > { %555 = vst.msk [vmem:[%s253_s25 + $0x18] sm:$0xff] %vm551_vm2, %v550_v17  ;;  %554 = vst.msk [vmem:[%s253_s25 + $0x10] sm:$0xff] %vm551_vm2, %v549_v18 }
 0x203   : > { %827 = shalt.err (!%p824_p4)
}
 0x204   : > { %s828_s7 = scalar_lea.hbm %s1135_s18, 512  ;;  %s832_s11 = scalar_lea.hbm %s1190_s4, 1024 }
 0x205   : > { %p829_p7 = scmp.ne.s32.totalorder %s1135_s18, %s828_s7  ;;  %p833_p1 = scmp.lt.u32.totalorder %s1135_s18, %s1190_s4 }
 0x206   : > { %p834_p3 = scmp.lt.u32.totalorder %s832_s11, %s828_s7  ;;  %p836_p8 = scmp.lt.u32.totalorder %s828_s7, %s1135_s18 }
 0x207   : > { %p830_p10 = pnand %p829_p7, %p1198_p11 }
 0x208   : > { %p835_p9 = por %p834_p3, %p833_p1 }
 0x209   : > { %p831_p12 = pneg %p830_p10 }
 0x20a   : > { %p837_p0 = por %p836_p8, %p835_p9 }
 0x20c   : > { %p838_p6 = pnand %p837_p0, %p831_p12 }
 0x20e   : > { %841 = shalt.err (!%p838_p6)
}
 0x20f   : > { %s912_s10 = smov 128   ;;  %s913_s24 = smov 8  }
 0x210   : > { %705 = dma.vmem_to_hbm [thread:$0]  (%p1198_p11), %s1126_s26, 512, %s1135_s18, %s557_s13, %s912_s10, %s912_s10, %s913_s24  }
 0x211 PF: > { %s586_s12 = sand.u32 1, %s876_s15   ;;  %p1199_p13 = scmp.ne.s32.totalorder %s1195_s30, 0 }
 0x212   : > { %p1200_p2 = scmp.ge.s32.totalorder %s896_s20, 2  ;;  %s587_s14 = scalar_lea.sflag [#allocation4], %s586_s12 }
 0x214   : > { %p712_p5 = pnand %p1200_p2, %p1199_p13 }
 0x216   : > { %871 = dma.done.wait (!%p712_p5), %s587_s14, 512  }
 0x217   : > { %873 = vsyncadd (!%p712_p5), %s587_s14, 4294966784  ;;  %s20_s20 = sadd.s32 1, %s896_s20   ;;  %s1201_s15 = smov %s880_s16 }
 0x218   : > { %p17_p4 = scmp.ge.s32.totalorder %s20_s20, 4   ;;  %s1202_s16 = smov %s884_s17 }
 0x219   : > { %s1203_s17 = smov %s995_s29  ;;  %s1204_s18 = smov %s892_s19 }
 0x21a   : > { %s1205_s19 = smov %s1207_s23  ;;  %19 = sbr.rel (!%p17_p4) target bundleno = 6 (0x6), region = 84 }
 0x221   :  { %592 = vsyncpa [#allocation3], 1 }
 0x222   :  { %594 = vsyncpa [#allocation3 + $0x1], 1 }
 0x223   :  { %595 = vsyncpa [#allocation4], 1 }
 0x224   :  { %597 = vsyncpa [#allocation4 + $0x1], 1 }

</bundles_post_ra>
